<compile_context>
chip_gen: v5e
topology: v5e:2x2
jax: 0.10.0
libtpu: 0.0.40
codegen_flags: <defaults>
</compile_context>

<pallas_src>
import functools

import jax
import jax.numpy as jnp
from jax.experimental import pallas as pl
from jax.experimental.pallas import tpu as pltpu


_ROW_TILE = 512      # destination-node rows of A per grid step (two-pass path)
_FUSE_MAX_NP = 2048  # fused single-kernel path when padded N <= this (A in VMEM)


def _round_up(n, m):
    return ((n + m - 1) // m) * m


def _vmem_limit_bytes():
    """Generation-aware VMEM limit: ~3/4 of physical, capped at 100 MiB."""
    default = 32 * 1024 * 1024
    try:
        cap = getattr(pltpu.get_tpu_info(), "vmem_capacity_bytes", None)
        if not cap:
            return default
        return max(default, min(100 * 1024 * 1024, (int(cap) * 3) // 4))
    except Exception:
        return default


# ---------------------------------------------------------------------------
# Adjacency construction (plain-JAX glue, shared with the reference)
# ---------------------------------------------------------------------------
def _normalized_adjacency(edge_index, n, pad_to):
    """D^-1/2 (A + I) D^-1/2 with PyG add_remaining_self_loops semantics:
    existing self-loop edges are dropped and exactly one unit self-loop per
    node is added.  Scatter-accumulated in f32 at the padded shape."""
    src, dst = edge_index[0], edge_index[1]
    w = jnp.where(src == dst, 0.0, 1.0).astype(jnp.float32)
    loop = jnp.arange(n, dtype=edge_index.dtype)
    src = jnp.concatenate([src, loop])
    dst = jnp.concatenate([dst, loop])
    w = jnp.concatenate([w, jnp.ones((n,), jnp.float32)])
    deg = jnp.zeros((n,), jnp.float32).at[dst].add(w)
    dinv = jnp.where(deg > 0, jax.lax.rsqrt(deg), 0.0)
    norm = dinv[src] * w * dinv[dst]
    return jnp.zeros((pad_to, pad_to), jnp.float32).at[dst, src].add(norm)


# ---------------------------------------------------------------------------
# Kernels
# ---------------------------------------------------------------------------
def _gcn_fused_kernel(a_ref, xw1_ref, b1_ref, w2_ref, b2_ref, o_ref):
    """Whole 2-layer GCN with A resident in VMEM (A read from HBM once)."""
    a = a_ref[...]                                                    # (Np, Np) bf16
    agg1 = jnp.dot(a, xw1_ref[...], preferred_element_type=jnp.float32)
    h = jnp.maximum(agg1 + b1_ref[...], 0.0).astype(jnp.bfloat16)     # bias + ReLU
    hw2 = jnp.dot(h, w2_ref[...],
                  preferred_element_type=jnp.float32).astype(jnp.bfloat16)
    agg2 = jnp.dot(a, hw2, preferred_element_type=jnp.float32)
    # Padded rows also get +b2; they are sliced off in the wrapper.
    o_ref[...] = (agg2 + b2_ref[...]).astype(o_ref.dtype)


def _gcn_layer1_kernel(a_ref, xw1_ref, b1_ref, w2_ref, o_ref):
    """o_tile = relu(A_tile @ (X W1) + b1) @ W2   (bf16 out, feeds layer 2)."""
    agg = jnp.dot(a_ref[...], xw1_ref[...],
                  preferred_element_type=jnp.float32)                 # (TM, 16) f32
    h = jnp.maximum(agg + b1_ref[...], 0.0).astype(jnp.bfloat16)      # bias + relu
    hw2 = jnp.dot(h, w2_ref[...], preferred_element_type=jnp.float32)  # (TM, 7)
    o_ref[...] = hw2.astype(o_ref.dtype)


def _gcn_layer2_kernel(a_ref, hw2_ref, b2_ref, o_ref):
    """o_tile = A_tile @ (H W2) + b2   (padded rows get +b2; sliced off later)."""
    agg = jnp.dot(a_ref[...], hw2_ref[...],
                  preferred_element_type=jnp.float32)                 # (TM, 7) f32
    o_ref[...] = (agg + b2_ref[...]).astype(o_ref.dtype)


# ---------------------------------------------------------------------------
# Wrapper
# ---------------------------------------------------------------------------
@functools.partial(jax.jit, static_argnames=("num_nodes",))
def gcn_forward(x, edge_index, w1, b1, w2, b2, *, num_nodes):
    """Forward of the GCN module (node-level task).  x: (N, 3) float32."""
    n = num_nodes
    hid = w1.shape[1]
    fout = w2.shape[1]

    fused = _round_up(n, 128) <= _FUSE_MAX_NP
    np_ = _round_up(n, 128) if fused else _round_up(n, _ROW_TILE)

    # ---- glue (plain JAX): dense normalized adjacency, f32 scatter -> bf16.
    a_bf = _normalized_adjacency(edge_index, n, np_).astype(jnp.bfloat16)

    # ---- tiny 3->16 transform stays in the wrapper (K=3, negligible);
    # zero-padded rows of X stay zero after the matmul.
    x_p = jnp.pad(x.astype(jnp.float32), ((0, np_ - n), (0, 0)))
    xw1 = jnp.dot(x_p, w1.astype(jnp.float32)).astype(jnp.bfloat16)   # (Np, 16)

    b1_r = b1.reshape(1, hid).astype(jnp.float32)
    b2_r = b2.reshape(1, fout).astype(jnp.float32)
    w2_bf = w2.astype(jnp.bfloat16)

    vmem_limit = _vmem_limit_bytes()

    if fused:
        # -------- single fused kernel: A read from HBM exactly once --------
        cost = pl.CostEstimate(
            flops=2 * np_ * np_ * hid + 2 * np_ * hid * fout + 2 * np_ * np_ * fout,
            transcendentals=0,
            bytes_accessed=np_ * np_ * 2 + np_ * hid * 2 + np_ * fout * 4,
        )
        out_p = pl.pallas_call(
            _gcn_fused_kernel,
            out_shape=jax.ShapeDtypeStruct((np_, fout), jnp.float32),
            grid=(1,),
            in_specs=[
                pl.BlockSpec((np_, np_), lambda i: (0, 0)),    # A (resident)
                pl.BlockSpec((np_, hid), lambda i: (0, 0)),    # X.W1
                pl.BlockSpec((1, hid), lambda i: (0, 0)),      # b1
                pl.BlockSpec((hid, fout), lambda i: (0, 0)),   # W2
                pl.BlockSpec((1, fout), lambda i: (0, 0)),     # b2
            ],
            out_specs=pl.BlockSpec((np_, fout), lambda i: (0, 0)),
            compiler_params=pltpu.CompilerParams(
                dimension_semantics=("arbitrary",),
                vmem_limit_bytes=vmem_limit,
            ),
            cost_estimate=cost,
        )(a_bf, xw1, b1_r, w2_bf, b2_r)
        return out_p[:n, :]

    # -------- two-pass row-tiled, double-buffered path (larger graphs) -----
    tm = _ROW_TILE
    grid = (np_ // tm,)
    cparams = pltpu.CompilerParams(
        dimension_semantics=("parallel",),       # shard row tiles across TCs
        vmem_limit_bytes=vmem_limit,
    )
    a_spec = pl.BlockSpec((tm, np_), lambda i: (i, 0))

    # pass 1: HW2 = relu(A @ (X W1) + b1) @ W2  (bf16)
    cost1 = pl.CostEstimate(
        flops=2 * np_ * np_ * hid + 2 * np_ * hid * fout,
        transcendentals=0,
        bytes_accessed=np_ * np_ * 2 + np_ * hid * 2 + np_ * fout * 2,
    )
    hw2 = pl.pallas_call(
        _gcn_layer1_kernel,
        out_shape=jax.ShapeDtypeStruct((np_, fout), jnp.bfloat16),
        grid=grid,
        in_specs=[
            a_spec,                                       # streamed A row tiles
            pl.BlockSpec((np_, hid), lambda i: (0, 0)),   # resident X.W1
            pl.BlockSpec((1, hid), lambda i: (0, 0)),     # b1
            pl.BlockSpec((hid, fout), lambda i: (0, 0)),  # W2 (bf16)
        ],
        out_specs=pl.BlockSpec((tm, fout), lambda i: (i, 0)),
        compiler_params=cparams,
        cost_estimate=cost1,
    )(a_bf, xw1, b1_r, w2_bf)

    # pass 2: out = A @ (H W2) + b2
    cost2 = pl.CostEstimate(
        flops=2 * np_ * np_ * fout,
        transcendentals=0,
        bytes_accessed=np_ * np_ * 2 + np_ * fout * (2 + 4),
    )
    out_p = pl.pallas_call(
        _gcn_layer2_kernel,
        out_shape=jax.ShapeDtypeStruct((np_, fout), jnp.float32),
        grid=grid,
        in_specs=[
            a_spec,                                       # streamed A row tiles
            pl.BlockSpec((np_, fout), lambda i: (0, 0)),  # resident H.W2
            pl.BlockSpec((1, fout), lambda i: (0, 0)),    # b2
        ],
        out_specs=pl.BlockSpec((tm, fout), lambda i: (i, 0)),
        compiler_params=cparams,
        cost_estimate=cost2,
    )(a_bf, hw2, b2_r)

    return out_p[:n, :]


def global_add_pool(x, batch, num_graphs):
    # TODO(synk): graph-level task (global_add_pool) kept as plain-JAX glue;
    # not exercised for the node-level config of this module.
    return jnp.zeros((num_graphs, x.shape[1]), x.dtype).at[batch].add(x)


# ---------------------------------------------------------------------------
# Pure-JAX f32 reference (same math, no Pallas, no bf16)
# ---------------------------------------------------------------------------
def _reference(x, edge_index, w1, b1, w2, b2, n):
    a_hat = _normalized_adjacency(edge_index, n, n)
    h = jnp.maximum(a_hat @ (x @ w1) + b1, 0.0)
    return a_hat @ (h @ w2) + b2


if __name__ == "__main__":
    key = jax.random.PRNGKey(0)
    F_IN, HIDDEN, F_OUT = 3, 16, 7

    def run_case(n, e, tag):
        ks = jax.random.split(jax.random.fold_in(key, n), 6)
        x = jax.random.normal(ks[0], (n, F_IN), jnp.float32)
        edge_index = jax.random.randint(ks[1], (2, e), 0, n, jnp.int32)
        w1 = jax.random.normal(ks[2], (F_IN, HIDDEN), jnp.float32) * (1.0 / jnp.sqrt(F_IN))
        b1 = jax.random.normal(ks[3], (HIDDEN,), jnp.float32) * 0.1
        w2 = jax.random.normal(ks[4], (HIDDEN, F_OUT), jnp.float32) * (1.0 / jnp.sqrt(HIDDEN))
        b2 = jax.random.normal(ks[5], (F_OUT,), jnp.float32) * 0.1

        out = gcn_forward(x, edge_index, w1, b1, w2, b2, num_nodes=n)
        out = jax.block_until_ready(out)
        ref = _reference(x, edge_index, w1, b1, w2, b2, n)
        assert out.shape == (n, F_OUT), (tag, out.shape)
        # bf16 A / features with f32 accumulation -> ~1% relative error expected.
        err = float(jnp.max(jnp.abs(out - ref)))
        scale = float(jnp.max(jnp.abs(ref))) + 1e-6
        assert err / scale < 5e-2, (tag, err, scale)

    # Small graph (16 nodes, 40 edges) -> fused single-kernel path.
    run_case(16, 40, "fused")
    # Larger graph -> two-pass row-tiled, double-buffered path.
    run_case(2500, 8000, "two_pass")

    print("KERNEL_OK")
</pallas_src>

<mosaic_0001>
module attributes {stable_mosaic.version = 11 : i64} {
  func.func @_gcn_fused_kernel(%arg0: i32, %arg1: memref<128x128xbf16, #tpu.memory_space<vmem>>, %arg2: memref<128x16xbf16, #tpu.memory_space<vmem>>, %arg3: memref<1x16xf32, #tpu.memory_space<vmem>>, %arg4: memref<16x7xbf16, #tpu.memory_space<vmem>>, %arg5: memref<1x7xf32, #tpu.memory_space<vmem>>, %arg6: memref<128x7xf32, #tpu.memory_space<vmem>>) attributes {dimension_semantics = [#tpu.dimension_semantics<arbitrary>], iteration_bounds = array<i64: 1>, scalar_prefetch = 0 : i64, scratch_operands = 0 : i64, tpu.core_type = #tpu.core_type<tc>, window_params = [{pipeline_mode = #tpu.pipeline_mode<synchronous>, transform_indices = @transform_0, window_bounds = array<i64: 128, 128>}, {pipeline_mode = #tpu.pipeline_mode<synchronous>, transform_indices = @transform_1, window_bounds = array<i64: 128, 16>}, {pipeline_mode = #tpu.pipeline_mode<synchronous>, transform_indices = @transform_2, window_bounds = array<i64: 1, 16>}, {pipeline_mode = #tpu.pipeline_mode<synchronous>, transform_indices = @transform_3, window_bounds = array<i64: 16, 7>}, {pipeline_mode = #tpu.pipeline_mode<synchronous>, transform_indices = @transform_4, window_bounds = array<i64: 1, 7>}, {pipeline_mode = #tpu.pipeline_mode<synchronous>, transform_indices = @transform_5, window_bounds = array<i64: 128, 7>}]} {
    %c0 = arith.constant 0 : index
    %c0_0 = arith.constant 0 : index
    %0 = vector.load %arg1[%c0, %c0_0] : memref<128x128xbf16, #tpu.memory_space<vmem>>, vector<128x128xbf16>
    %c0_1 = arith.constant 0 : index
    %c0_2 = arith.constant 0 : index
    %1 = vector.load %arg2[%c0_1, %c0_2] : memref<128x16xbf16, #tpu.memory_space<vmem>>, vector<128x16xbf16>
    %cst = arith.constant dense<0.000000e+00> : vector<128x16xf32>
    %2 = tpu.matmul %0, %1, %cst {dimension_numbers = #tpu.dot_dimension_numbers<[1], [0], [0], [1], [0, 0, 1, 1], [], []>} : vector<128x128xbf16>, vector<128x16xbf16>, vector<128x16xf32> -> vector<128x16xf32>
    %c0_3 = arith.constant 0 : index
    %c0_4 = arith.constant 0 : index
    %3 = vector.load %arg3[%c0_3, %c0_4] : memref<1x16xf32, #tpu.memory_space<vmem>>, vector<1x16xf32>
    %4 = vector.broadcast %3 : vector<1x16xf32> to vector<128x16xf32>
    %5 = arith.addf %2, %4 : vector<128x16xf32>
    %cst_5 = arith.constant 0.000000e+00 : f32
    %6 = vector.broadcast %cst_5 : f32 to vector<128x16xf32>
    %7 = arith.maximumf %5, %6 : vector<128x16xf32>
    %8 = arith.truncf %7 : vector<128x16xf32> to vector<128x16xbf16>
    %c0_6 = arith.constant 0 : index
    %c0_7 = arith.constant 0 : index
    %9 = vector.load %arg4[%c0_6, %c0_7] : memref<16x7xbf16, #tpu.memory_space<vmem>>, vector<16x7xbf16>
    %cst_8 = arith.constant dense<0.000000e+00> : vector<128x7xf32>
    %10 = tpu.matmul %8, %9, %cst_8 {dimension_numbers = #tpu.dot_dimension_numbers<[1], [0], [0], [1], [0, 0, 1, 1], [], []>} : vector<128x16xbf16>, vector<16x7xbf16>, vector<128x7xf32> -> vector<128x7xf32>
    %11 = arith.truncf %10 : vector<128x7xf32> to vector<128x7xbf16>
    %cst_9 = arith.constant dense<0.000000e+00> : vector<128x7xf32>
    %12 = tpu.matmul %0, %11, %cst_9 {dimension_numbers = #tpu.dot_dimension_numbers<[1], [0], [0], [1], [0, 0, 1, 1], [], []>} : vector<128x128xbf16>, vector<128x7xbf16>, vector<128x7xf32> -> vector<128x7xf32>
    %c0_10 = arith.constant 0 : index
    %c0_11 = arith.constant 0 : index
    %13 = vector.load %arg5[%c0_10, %c0_11] : memref<1x7xf32, #tpu.memory_space<vmem>>, vector<1x7xf32>
    %14 = vector.broadcast %13 : vector<1x7xf32> to vector<128x7xf32>
    %15 = arith.addf %12, %14 : vector<128x7xf32>
    %c0_12 = arith.constant 0 : index
    %c0_13 = arith.constant 0 : index
    %16 = vector.load %arg6[%c0_12, %c0_13] : memref<128x7xf32, #tpu.memory_space<vmem>>, vector<128x7xf32>
    tpu.vector_store %arg6[%c0_12, %c0_13], %15 {strides = array<i32>} : memref<128x7xf32, #tpu.memory_space<vmem>>, vector<128x7xf32>,
    return
  }
  func.func @transform_0(%arg0: i32) -> (i32, i32) {
    %c0_i32 = arith.constant 0 : i32
    %c0_i32_0 = arith.constant 0 : i32
    %c0_i32_1 = arith.constant 0 : i32
    return %c0_i32, %c0_i32_0 : i32, i32
  }
  func.func @transform_1(%arg0: i32) -> (i32, i32) {
    %c0_i32 = arith.constant 0 : i32
    %c0_i32_0 = arith.constant 0 : i32
    %c0_i32_1 = arith.constant 0 : i32
    return %c0_i32, %c0_i32_0 : i32, i32
  }
  func.func @transform_2(%arg0: i32) -> (i32, i32) {
    %c0_i32 = arith.constant 0 : i32
    %c0_i32_0 = arith.constant 0 : i32
    %c0_i32_1 = arith.constant 0 : i32
    return %c0_i32, %c0_i32_0 : i32, i32
  }
  func.func @transform_3(%arg0: i32) -> (i32, i32) {
    %c0_i32 = arith.constant 0 : i32
    %c0_i32_0 = arith.constant 0 : i32
    %c0_i32_1 = arith.constant 0 : i32
    return %c0_i32, %c0_i32_0 : i32, i32
  }
  func.func @transform_4(%arg0: i32) -> (i32, i32) {
    %c0_i32 = arith.constant 0 : i32
    %c0_i32_0 = arith.constant 0 : i32
    %c0_i32_1 = arith.constant 0 : i32
    return %c0_i32, %c0_i32_0 : i32, i32
  }
  func.func @transform_5(%arg0: i32) -> (i32, i32) {
    %c0_i32 = arith.constant 0 : i32
    %c0_i32_0 = arith.constant 0 : i32
    %c0_i32_1 = arith.constant 0 : i32
    return %c0_i32, %c0_i32_0 : i32, i32
  }
}

</mosaic_0001>

<bundles_post_ra>
// kernel: gcn_forward.1
= control target key start
LH: loop header
LB: loop body
LE: loop exit
PB: predicated region body
PF: predicated region fallthrough
CT: control target
= control target key end

     0   :  { %vm234_vm0 = vcmask 130048   ;;  %vm369_vm1 = vcmask 56320   ;;  %s692_s1 = inlined_call_operand.vmem [shape: bf16[128,16], index: 1, kind: input, shape index: {}]   ;;  %s693_s2 = inlined_call_operand.vmem [shape: f32[1,16], index: 2, kind: input, shape index: {}]   ;;  %s694_s0 = inlined_call_operand.vmem [shape: bf16[128,128], index: 0, kind: input, shape index: {}]   ;;  %s695_s3 = inlined_call_operand.vmem [shape: bf16[16,7], index: 3, kind: input, shape index: {}]   ;;  %s696_s4 = inlined_call_operand.vmem [shape: f32[1,7], index: 4, kind: input, shape index: {}]   ;;  %s697_s5 = inlined_call_operand.vmem [shape: f32[128,7], index: 5, kind: output, shape index: {}]  }
   0x1   :  { %v481_v0 = vld [vmem:[%s692_s1 + $0x38] sm:$0xff]  ;;  %v480_v1 = vld [vmem:[%s692_s1 + $0x30] sm:$0xff]  ;;  %v479_v2 = vld [vmem:[%s692_s1 + $0x28] sm:$0xff] }
   0x2   :  { %153 = vmatpush.bf16.msra.mxu0 %v481_v0  ;;  %483 = vmatpush.bf16.msra.mxu3 %v481_v0  ;;  %v478_v3 = vld [vmem:[%s692_s1 + $0x20] sm:$0xff]  ;;  %v477_v4 = vld [vmem:[%s692_s1 + $0x18] sm:$0xff]  ;;  %v476_v5 = vld [vmem:[%s692_s1 + $0x10] sm:$0xff] }
   0x3   :  { %v475_v6 = vld [vmem:[%s692_s1 + $0x8] sm:$0xff]  ;;  %v474_v7 = vld [vmem:[%s692_s1] sm:$0xff]  ;;  %v570_v10 = vld [vmem:[%s694_s0 + $0x10] sm:$0xff] }
   0x4   :  { %v558_v8 = vld [vmem:[%s694_s0] sm:$0xff]  ;;  %v564_v9 = vld [vmem:[%s694_s0 + $0x8] sm:$0xff]  ;;  %v576_v11 = vld [vmem:[%s694_s0 + $0x18] sm:$0xff] }
   0x5   :  { %v582_v12 = vld [vmem:[%s694_s0 + $0x30] sm:$0xff]  ;;  %v588_v13 = vld [vmem:[%s694_s0 + $0x20] sm:$0xff]  ;;  %v593_v14 = vld [vmem:[%s694_s0 + $0x38] sm:$0xff] }
   0x6   :  { %154 = vmatpush.bf16.msra.mxu0 %v480_v1  ;;  %484 = vmatpush.bf16.msra.mxu3 %v480_v1  ;;  %v600_v15 = vld [vmem:[%s694_s0 + $0x28] sm:$0xff]  ;;  %v482_v16 = vld [vmem:[%s695_s3] sm:$0xff] }
   0x7   :  { %266 = vmatpush.bf16.msra.mxu1 %v482_v16  ;;  %v499_v18 = vld [vmem:[%s693_s2] ss:$0 sm:$0xff] }
   0xa   :  { %155 = vmatpush.bf16.msra.mxu0 %v479_v2  ;;  %485 = vmatpush.bf16.msra.mxu3 %v479_v2 }
   0xe   :  { %156 = vmatpush.bf16.msra.mxu0 %v478_v3  ;;  %486 = vmatpush.bf16.msra.mxu3 %v478_v3 }
  0x12   :  { %157 = vmatpush.bf16.msra.mxu0 %v477_v4  ;;  %487 = vmatpush.bf16.msra.mxu3 %v477_v4 }
  0x16   :  { %158 = vmatpush.bf16.msra.mxu0 %v476_v5  ;;  %488 = vmatpush.bf16.msra.mxu3 %v476_v5 }
  0x1a   :  { %159 = vmatpush.bf16.msra.mxu0 %v475_v6  ;;  %489 = vmatpush.bf16.msra.mxu3 %v475_v6 }
  0x1e   :  { %160 = vmatpush.bf16.msra.mxu0 %v474_v7  ;;  %490 = vmatpush.bf16.msra.mxu3 %v474_v7 }
  0x21   :  { %161 = vmatmul.bf16.vlgmr.msra.gmra.mxu0 %v558_v8  ;;  %191 = vmatmul.bf16.vlgmr.msra.gmra.mxu3 %v582_v12 }
  0x31   :  { %166 = vmatmul.bf16.gmra.mxu0 %v564_v9  ;;  %196 = vmatmul.bf16.gmra.mxu3 %v593_v14 }
  0x41   :  { %171 = vmatmul.bf16.gmra.mxu0 %v570_v10 }
  0x51   :  { %176 = vmatmul.bf16.gmra.mxu0 %v576_v11 }
  0x61   :  { %181 = vmatmul.bf16.gmra.mxu0 %v588_v13 }
  0x71   :  { %186 = vmatmul.bf16.gmra.mxu0 %v600_v15 }
  0x9e   :  { %v162_v17 = vpop.f32.mrf.mxu0 }
  0x9f   :  { %v163_v19 = vadd.f32 %v499_v18, %v162_v17 }
  0xa1   :  { %v202_v22 = vmax.f32 %v163_v19, 0.0 }
  0xa4   :  { %v192_v54 = vpop.f32.mrf.mxu3 }
  0xa5   :  { %v193_v62 = vadd.f32 %v499_v18, %v192_v54 }
  0xa6   :  { %v164_v20 = vpop.f32.mrf.mxu0 }
  0xa7   :  { %v165_v21 = vadd.f32 %v499_v18, %v164_v20  ;;  %v214_v1 = vmax.f32 %v193_v62, 0.0 }
  0xa9   :  { %v203_v23 = vmax.f32 %v165_v21, 0.0 }
  0xab   :  { %v218_v24 = vpack.c.bf16 %v203_v23, %v202_v22 }
  0xac   :  { %v194_v61 = vpop.f32.mrf.mxu3 }
  0xad   :  { %458 = vmatmul.msk.bf16.vlgmr.msra.gmra.mxu1 %vm234_vm0, %v218_v24  ;;  %v195_v63 = vadd.f32 %v499_v18, %v194_v61 }
  0xae   :  { %v167_v25 = vpop.f32.mrf.mxu0 }
  0xaf   :  { %v168_v26 = vadd.f32 %v499_v18, %v167_v25  ;;  %v215_v2 = vmax.f32 %v195_v63, 0.0 }
  0xb1   :  { %v204_v29 = vmax.f32 %v168_v26, 0.0  ;;  %v224_v3 = vpack.c.bf16 %v215_v2, %v214_v1 }
  0xb4   :  { %v197_v0 = vpop.f32.mrf.mxu3 }
  0xb5   :  { %v198_v5 = vadd.f32 %v499_v18, %v197_v0 }
  0xb6   :  { %v169_v27 = vpop.f32.mrf.mxu0 }
  0xb7   :  { %v170_v28 = vadd.f32 %v499_v18, %v169_v27  ;;  %v216_v7 = vmax.f32 %v198_v5, 0.0 }
  0xb9   :  { %v205_v30 = vmax.f32 %v170_v28, 0.0 }
  0xbb   :  { %v219_v31 = vpack.c.bf16 %v205_v30, %v204_v29 }
  0xbc   :  { %v199_v4 = vpop.f32.mrf.mxu3 }
  0xbd   :  { %459 = vmatmul.msk.bf16.gmra.mxu1 %vm234_vm0, %v219_v31  ;;  %v200_v6 = vadd.f32 %v499_v18, %v199_v4 }
  0xbe   :  { %v172_v32 = vpop.f32.mrf.mxu0 }
  0xbf   :  { %v173_v33 = vadd.f32 %v499_v18, %v172_v32  ;;  %v217_v16 = vmax.f32 %v200_v6, 0.0 }
  0xc1   :  { %v206_v36 = vmax.f32 %v173_v33, 0.0  ;;  %v225_v17 = vpack.c.bf16 %v217_v16, %v216_v7 }
  0xc6   :  { %v174_v34 = vpop.f32.mrf.mxu0 }
  0xc7   :  { %v175_v35 = vadd.f32 %v499_v18, %v174_v34 }
  0xc9   :  { %v207_v37 = vmax.f32 %v175_v35, 0.0 }
  0xcb   :  { %v220_v38 = vpack.c.bf16 %v207_v37, %v206_v36 }
  0xcd   :  { %460 = vmatmul.msk.bf16.gmra.mxu1 %vm234_vm0, %v220_v38 }
  0xce   :  { %v177_v39 = vpop.f32.mrf.mxu0 }
  0xcf   :  { %v178_v40 = vadd.f32 %v499_v18, %v177_v39 }
  0xd1   :  { %v208_v43 = vmax.f32 %v178_v40, 0.0 }
  0xd6   :  { %v179_v41 = vpop.f32.mrf.mxu0 }
  0xd7   :  { %v180_v42 = vadd.f32 %v499_v18, %v179_v41 }
  0xd9   :  { %v209_v44 = vmax.f32 %v180_v42, 0.0  ;;  %v500_v42 = vld [vmem:[%s696_s4] ss:$0 sm:$0xff] }
  0xdb   :  { %v221_v45 = vpack.c.bf16 %v209_v44, %v208_v43 }
  0xdd   :  { %461 = vmatmul.msk.bf16.gmra.mxu1 %vm234_vm0, %v221_v45 }
  0xde   :  { %v182_v46 = vpop.f32.mrf.mxu0 }
  0xdf   :  { %v183_v47 = vadd.f32 %v499_v18, %v182_v46 }
  0xe1   :  { %v210_v50 = vmax.f32 %v183_v47, 0.0 }
  0xe6   :  { %v184_v48 = vpop.f32.mrf.mxu0 }
  0xe7   :  { %v185_v49 = vadd.f32 %v499_v18, %v184_v48 }
  0xe9   :  { %v211_v51 = vmax.f32 %v185_v49, 0.0 }
  0xeb   :  { %v222_v52 = vpack.c.bf16 %v211_v51, %v210_v50 }
  0xed   :  { %462 = vmatmul.msk.bf16.gmra.mxu1 %vm234_vm0, %v222_v52 }
  0xee   :  { %v187_v53 = vpop.f32.mrf.mxu0 }
  0xef   :  { %v188_v55 = vadd.f32 %v499_v18, %v187_v53 }
  0xf1   :  { %v212_v58 = vmax.f32 %v188_v55, 0.0 }
  0xf6   :  { %v189_v56 = vpop.f32.mrf.mxu0 }
  0xf7   :  { %v190_v57 = vadd.f32 %v499_v18, %v189_v56 }
  0xf9   :  { %v213_v59 = vmax.f32 %v190_v57, 0.0 }
  0xfb   :  { %v223_v60 = vpack.c.bf16 %v213_v59, %v212_v58 }
  0xfd   :  { %463 = vmatmul.msk.bf16.gmra.mxu1 %vm234_vm0, %v223_v60 }
 0x10d   :  { %464 = vmatmul.msk.bf16.gmra.mxu1 %vm234_vm0, %v224_v3 }
 0x11d   :  { %465 = vmatmul.msk.bf16.gmra.mxu1 %vm234_vm0, %v225_v17 }
 0x12a   :  { %v268_v19 = vpop.f32.mrf.mxu1 }
 0x132   :  { %v270_v20 = vpop.f32.mrf.mxu1 }
 0x133   :  { %v308_v21 = vpack.c.bf16 %v270_v20, %v268_v19 }
 0x13a   :  { %v273_v22 = vpop.f32.mrf.mxu1 }
 0x142   :  { %v275_v23 = vpop.f32.mrf.mxu1 }
 0x143   :  { %v309_v24 = vpack.c.bf16 %v275_v23, %v273_v22 }
 0x14a   :  { %v278_v25 = vpop.f32.mrf.mxu1 }
 0x152   :  { %v280_v26 = vpop.f32.mrf.mxu1 }
 0x153   :  { %v310_v27 = vpack.c.bf16 %v280_v26, %v278_v25 }
 0x15a   :  { %v283_v28 = vpop.f32.mrf.mxu1 }
 0x162   :  { %v285_v29 = vpop.f32.mrf.mxu1 }
 0x163   :  { %v311_v30 = vpack.c.bf16 %v285_v29, %v283_v28 }
 0x16a   :  { %v288_v31 = vpop.f32.mrf.mxu1 }
 0x172   :  { %v290_v32 = vpop.f32.mrf.mxu1 }
 0x173   :  { %v312_v41 = vpack.c.bf16 %v290_v32, %v288_v31 }
 0x17a   :  { %v293_v18 = vpop.f32.mrf.mxu1 }
 0x182   :  { %v295_v33 = vpop.f32.mrf.mxu1 }
 0x183   :  { %v313_v40 = vpack.c.bf16 %v295_v33, %v293_v18 }
 0x18a   :  { %v298_v34 = vpop.f32.mrf.mxu1 }
 0x192   :  { %v300_v35 = vpop.f32.mrf.mxu1 }
 0x193   :  { %v314_v39 = vpack.c.bf16 %v300_v35, %v298_v34 }
 0x19a   :  { %v303_v36 = vpop.f32.mrf.mxu1 }
 0x1a2   :  { %v305_v37 = vpop.f32.mrf.mxu1 }
 0x1a3   :  { %v315_v38 = vpack.c.bf16 %v305_v37, %v303_v36 }
 0x1a5   :  { %320 = vmatpush.bf16.msra.mxu2 %v315_v38  ;;  %491 = vmatpush.bf16.msrb.mxu3 %v315_v38 }
 0x1a9   :  { %321 = vmatpush.bf16.msra.mxu2 %v314_v39  ;;  %492 = vmatpush.bf16.msrb.mxu3 %v314_v39 }
 0x1ad   :  { %322 = vmatpush.bf16.msra.mxu2 %v313_v40  ;;  %493 = vmatpush.bf16.msrb.mxu3 %v313_v40 }
 0x1b1   :  { %323 = vmatpush.bf16.msra.mxu2 %v312_v41  ;;  %494 = vmatpush.bf16.msrb.mxu3 %v312_v41 }
 0x1b5   :  { %324 = vmatpush.bf16.msra.mxu2 %v311_v30  ;;  %495 = vmatpush.bf16.msrb.mxu3 %v311_v30 }
 0x1b9   :  { %325 = vmatpush.bf16.msra.mxu2 %v310_v27  ;;  %496 = vmatpush.bf16.msrb.mxu3 %v310_v27 }
 0x1bd   :  { %326 = vmatpush.bf16.msra.mxu2 %v309_v24  ;;  %497 = vmatpush.bf16.msrb.mxu3 %v309_v24 }
 0x1c1   :  { %327 = vmatpush.bf16.msra.mxu2 %v308_v21  ;;  %498 = vmatpush.bf16.msrb.mxu3 %v308_v21 }
 0x1c4   :  { %328 = vmatmul.bf16.vlgmr.msra.gmra.mxu2 %v558_v8  ;;  %358 = vmatmul.bf16.vlgmr.msrb.gmra.mxu3 %v582_v12 }
 0x1d4   :  { %333 = vmatmul.bf16.gmra.mxu2 %v564_v9  ;;  %363 = vmatmul.bf16.gmra.mxu3 %v593_v14 }
 0x1e4   :  { %338 = vmatmul.bf16.gmra.mxu2 %v570_v10 }
 0x1f4   :  { %343 = vmatmul.bf16.gmra.mxu2 %v576_v11 }
 0x204   :  { %348 = vmatmul.bf16.gmra.mxu2 %v588_v13 }
 0x214   :  { %353 = vmatmul.bf16.gmra.mxu2 %v600_v15 }
 0x247   :  { %v329_v43 = vpop.f32.mrf.mxu2  ;;  %v359_v14 = vpop.f32.mrf.mxu3 }
 0x248   :  { %v330_v8 = vadd.f32 %v500_v42, %v329_v43  ;;  %v360_v44 = vadd.f32 %v500_v42, %v359_v14 }
 0x24a   :  { %370 = vst.msk [vmem:[%s697_s5] sm:$0xff] %vm369_vm1, %v330_v8 }
 0x24b   :  { %382 = vst.msk [vmem:[%s697_s5 + $0x60] sm:$0xff] %vm369_vm1, %v360_v44 }
 0x24f   :  { %v331_v9 = vpop.f32.mrf.mxu2  ;;  %v361_v46 = vpop.f32.mrf.mxu3 }
 0x250   :  { %v332_v10 = vadd.f32 %v500_v42, %v331_v9  ;;  %v362_v48 = vadd.f32 %v500_v42, %v361_v46 }
 0x252   :  { %371 = vst.msk [vmem:[%s697_s5 + $0x8] sm:$0xff] %vm369_vm1, %v332_v10 }
 0x253   :  { %383 = vst.msk [vmem:[%s697_s5 + $0x68] sm:$0xff] %vm369_vm1, %v362_v48 }
 0x257   :  { %v334_v11 = vpop.f32.mrf.mxu2  ;;  %v364_v50 = vpop.f32.mrf.mxu3 }
 0x258   :  { %v335_v12 = vadd.f32 %v500_v42, %v334_v11  ;;  %v365_v52 = vadd.f32 %v500_v42, %v364_v50 }
 0x25a   :  { %372 = vst.msk [vmem:[%s697_s5 + $0x10] sm:$0xff] %vm369_vm1, %v335_v12 }
 0x25b   :  { %384 = vst.msk [vmem:[%s697_s5 + $0x70] sm:$0xff] %vm369_vm1, %v365_v52 }
 0x25f   :  { %v336_v13 = vpop.f32.mrf.mxu2  ;;  %v366_v54 = vpop.f32.mrf.mxu3 }
 0x260   :  { %v337_v15 = vadd.f32 %v500_v42, %v336_v13  ;;  %v367_v56 = vadd.f32 %v500_v42, %v366_v54 }
 0x262   :  { %373 = vst.msk [vmem:[%s697_s5 + $0x18] sm:$0xff] %vm369_vm1, %v337_v15 }
 0x263   :  { %385 = vst.msk [vmem:[%s697_s5 + $0x78] sm:$0xff] %vm369_vm1, %v367_v56 }
 0x267   :  { %v339_v45 = vpop.f32.mrf.mxu2 }
 0x268   :  { %v340_v47 = vadd.f32 %v500_v42, %v339_v45 }
 0x26a   :  { %374 = vst.msk [vmem:[%s697_s5 + $0x20] sm:$0xff] %vm369_vm1, %v340_v47 }
 0x26f   :  { %v341_v49 = vpop.f32.mrf.mxu2 }
 0x270   :  { %v342_v51 = vadd.f32 %v500_v42, %v341_v49 }
 0x272   :  { %375 = vst.msk [vmem:[%s697_s5 + $0x28] sm:$0xff] %vm369_vm1, %v342_v51 }
 0x277   :  { %v344_v53 = vpop.f32.mrf.mxu2 }
 0x278   :  { %v345_v55 = vadd.f32 %v500_v42, %v344_v53 }
 0x27a   :  { %376 = vst.msk [vmem:[%s697_s5 + $0x30] sm:$0xff] %vm369_vm1, %v345_v55 }
 0x27f   :  { %v346_v57 = vpop.f32.mrf.mxu2 }
 0x280   :  { %v347_v58 = vadd.f32 %v500_v42, %v346_v57 }
 0x282   :  { %377 = vst.msk [vmem:[%s697_s5 + $0x38] sm:$0xff] %vm369_vm1, %v347_v58 }
 0x287   :  { %v349_v59 = vpop.f32.mrf.mxu2 }
 0x288   :  { %v350_v60 = vadd.f32 %v500_v42, %v349_v59 }
 0x28a   :  { %378 = vst.msk [vmem:[%s697_s5 + $0x40] sm:$0xff] %vm369_vm1, %v350_v60 }
 0x28f   :  { %v351_v61 = vpop.f32.mrf.mxu2 }
 0x290   :  { %v352_v62 = vadd.f32 %v500_v42, %v351_v61 }
 0x292   :  { %379 = vst.msk [vmem:[%s697_s5 + $0x48] sm:$0xff] %vm369_vm1, %v352_v62 }
 0x297   :  { %v354_v63 = vpop.f32.mrf.mxu2 }
 0x298   :  { %v355_v0 = vadd.f32 %v500_v42, %v354_v63 }
 0x29a   :  { %380 = vst.msk [vmem:[%s697_s5 + $0x50] sm:$0xff] %vm369_vm1, %v355_v0 }
 0x29f   :  { %v356_v1 = vpop.f32.mrf.mxu2 }
 0x2a0   :  { %v357_v2 = vadd.f32 %v500_v42, %v356_v1 }
 0x2a2   :  { %381 = vst.msk [vmem:[%s697_s5 + $0x58] sm:$0xff] %vm369_vm1, %v357_v2 }

</bundles_post_ra>
